<compile_context>
chip_gen: v7x
topology: tpu7x:2x2x1
jax: 0.10.0
libtpu: 0.0.40
codegen_flags: <defaults>
</compile_context>

<pallas_src>
import jax
import jax.numpy as jnp
from jax.experimental import pallas as pl
from jax.experimental.pallas import tpu as pltpu


def _round_up(x, m):
    return ((x + m - 1) // m) * m


def _make_kernel(D, C):
    def kernel(x_ref, wab_ref, bab_ref, wc_ref, bc_ref, out_ref):
        x = x_ref[...]

        # Fused gate projection: one MXU pass over x for both Wa and Wb.
        ab = (
            jnp.dot(x, wab_ref[...], preferred_element_type=jnp.float32)
            + bab_ref[...]
        )
        a = jnp.tanh(ab[:, :D])            # attention_a: Tanh
        b = jax.nn.sigmoid(ab[:, D:])      # attention_b: Sigmoid
        gated = a * b                      # (TN, D) in f32

        if C == 1:
            # Width-1 projection: keep it off the MXU. wc_ref is (1, D) and
            # broadcasts over the TN rows; VPU multiply + XLU lane reduce.
            A = (
                jnp.sum(gated * wc_ref[...], axis=-1, keepdims=True)
                + bc_ref[...]
            )
        else:
            # General case: gated @ Wc^T on the MXU (wc_ref stored as (C, D)).
            A = (
                jax.lax.dot_general(
                    gated.astype(wc_ref.dtype),
                    wc_ref[...],
                    dimension_numbers=(((1,), (1,)), ((), ())),
                    preferred_element_type=jnp.float32,
                )
                + bc_ref[...]
            )
        out_ref[...] = A.astype(out_ref.dtype)

    return kernel


def attn_net_gated(x, wa, ba, wb, bb, wc, bc, *, block_n=512, matmul_dtype=None):
    """Pallas forward of Attn_Net_Gated. Returns (A, x) like the PyTorch module.

    x:  (N, L)
    wa: (L, D)  ba: (1, D)     (attention_a Linear, weight pre-transposed)
    wb: (L, D)  bb: (1, D)     (attention_b Linear, weight pre-transposed)
    wc: (D, C)  bc: (1, C)     (attention_c Linear, weight pre-transposed)
    """
    N, L = x.shape
    D = wa.shape[1]
    C = wc.shape[1]

    # Fuse the two gate projections into a single (L, 2D) weight / (1, 2D) bias.
    wab = jnp.concatenate([wa, wb], axis=1)
    bab = jnp.concatenate([ba, bb], axis=1).astype(jnp.float32)
    # Wc kept in (C, D) layout: lane-dense along D, used as a broadcast row
    # when C == 1 and as the RHS of a contracted dot_general otherwise.
    wc_t = jnp.transpose(wc).astype(jnp.float32)
    bc_f = bc.astype(jnp.float32)

    x_mm = x
    if matmul_dtype is not None:
        # Halve HBM traffic for x and the fused weight; accumulate in f32.
        x_mm = x.astype(matmul_dtype)
        wab = wab.astype(matmul_dtype)

    # Tile the token axis; pad N to a multiple of the tile so block shapes are
    # (8k, 128k)-aligned (or equal to the full dim).
    tn = min(block_n, _round_up(N, 8))
    n_pad = _round_up(N, tn)
    if n_pad != N:
        x_mm = jnp.pad(x_mm, ((0, n_pad - N), (0, 0)))
    grid = (n_pad // tn,)

    # Explicit VMEM budget (headroom, capped well below v7x's 64 MiB physical).
    in_item = jnp.dtype(x_mm.dtype).itemsize
    w_item = jnp.dtype(wab.dtype).itemsize
    est = (
        2 * tn * L * in_item                   # double-buffered x tiles
        + 2 * (L * 2 * D + 2 * D) * w_item     # fused weight + bias
        + 2 * (C * D + C) * 4                  # wc / bc
        + 2 * tn * C * jnp.dtype(x.dtype).itemsize  # output tiles
        + 6 * tn * 2 * D * 4                   # f32 intermediates
    )
    vmem_limit = int(min(max(2 * est, 32 * 1024 * 1024), 48 * 1024 * 1024))

    A_pad = pl.pallas_call(
        _make_kernel(D, C),
        out_shape=jax.ShapeDtypeStruct((n_pad, C), x.dtype),
        grid=grid,
        in_specs=[
            pl.BlockSpec((tn, L), lambda i: (i, 0)),      # x: pipelined over N
            pl.BlockSpec((L, 2 * D), lambda i: (0, 0)),   # fused Wa|Wb (resident)
            pl.BlockSpec((1, 2 * D), lambda i: (0, 0)),   # fused ba|bb (resident)
            pl.BlockSpec((C, D), lambda i: (0, 0)),       # Wc (resident)
            pl.BlockSpec((1, C), lambda i: (0, 0)),       # bc (resident)
        ],
        out_specs=pl.BlockSpec((tn, C), lambda i: (i, 0)),
        compiler_params=pltpu.CompilerParams(
            dimension_semantics=("parallel",),            # shard N-tiles on v7x
            vmem_limit_bytes=vmem_limit,
        ),
    )(x_mm, wab, bab, wc_t, bc_f)

    A = A_pad[:N] if n_pad != N else A_pad
    return A, x


def init_linear(key, fan_in, fan_out, dtype=jnp.float32):
    """PyTorch nn.Linear default init: U(-1/sqrt(fan_in), 1/sqrt(fan_in)).
    Returns weight already transposed to (fan_in, fan_out)."""
    kw, kb = jax.random.split(key)
    bound = 1.0 / (fan_in ** 0.5)
    w = jax.random.uniform(kw, (fan_in, fan_out), dtype, -bound, bound)
    b = jax.random.uniform(kb, (1, fan_out), dtype, -bound, bound)
    return w, b


def _ref_forward(x, wa, ba, wb, bb, wc, bc):
    a = jnp.tanh(x @ wa + ba)
    b = jax.nn.sigmoid(x @ wb + bb)
    return (a * b) @ wc + bc


if __name__ == "__main__":
    # TODO(synk): optional nn.Dropout(0.25) branch (dropout=True) is not
    # implemented; the module default (dropout=False) is covered.
    key = jax.random.PRNGKey(0)

    # Test 1: module-default n_classes=1 (VPU/XLU projection path).
    N, L, D, C = 8, 32, 16, 1
    kx, ka, kb, kc = jax.random.split(key, 4)
    x = jax.random.normal(kx, (N, L), jnp.float32)
    wa, ba = init_linear(ka, L, D)
    wb, bb = init_linear(kb, L, D)
    wc, bc = init_linear(kc, D, C)

    A, x_out = attn_net_gated(x, wa, ba, wb, bb, wc, bc)
    jax.block_until_ready((A, x_out))
    A_ref = _ref_forward(x, wa, ba, wb, bb, wc, bc)
    assert A.shape == (N, C)
    assert x_out.shape == (N, L)
    assert jnp.allclose(A, A_ref, atol=1e-5, rtol=1e-5)
    assert jnp.array_equal(x_out, x)

    # Test 2: N not a multiple of the tile, C > 1, multi-step pipelined grid.
    N2, C2 = 40, 3
    k2 = jax.random.split(key, 8)
    x2 = jax.random.normal(k2[4], (N2, L), jnp.float32)
    wa2, ba2 = init_linear(k2[5], L, D)
    wb2, bb2 = init_linear(k2[6], L, D)
    wc2, bc2 = init_linear(k2[7], D, C2)

    A2, x2_out = attn_net_gated(x2, wa2, ba2, wb2, bb2, wc2, bc2, block_n=16)
    jax.block_until_ready((A2, x2_out))
    A2_ref = _ref_forward(x2, wa2, ba2, wb2, bb2, wc2, bc2)
    assert A2.shape == (N2, C2)
    assert jnp.allclose(A2, A2_ref, atol=1e-5, rtol=1e-5)
    assert jnp.array_equal(x2_out, x2)

    print("KERNEL_OK")
</pallas_src>

<mosaic_0001>
module attributes {stable_mosaic.version = 11 : i64} {
  func.func @kernel(%arg0: i32, %arg1: memref<8x32xf32, #tpu.memory_space<vmem>>, %arg2: memref<32x32xf32, #tpu.memory_space<vmem>>, %arg3: memref<1x32xf32, #tpu.memory_space<vmem>>, %arg4: memref<1x16xf32, #tpu.memory_space<vmem>>, %arg5: memref<1x1xf32, #tpu.memory_space<vmem>>, %arg6: memref<8x1xf32, #tpu.memory_space<vmem>>) attributes {dimension_semantics = [#tpu.dimension_semantics<parallel>], iteration_bounds = array<i64: 1>, scalar_prefetch = 0 : i64, scratch_operands = 0 : i64, tpu.core_type = #tpu.core_type<tc>, window_params = [{transform_indices = @transform_0, window_bounds = array<i64: 8, 32>}, {pipeline_mode = #tpu.pipeline_mode<synchronous>, transform_indices = @transform_1, window_bounds = array<i64: 32, 32>}, {pipeline_mode = #tpu.pipeline_mode<synchronous>, transform_indices = @transform_2, window_bounds = array<i64: 1, 32>}, {pipeline_mode = #tpu.pipeline_mode<synchronous>, transform_indices = @transform_3, window_bounds = array<i64: 1, 16>}, {pipeline_mode = #tpu.pipeline_mode<synchronous>, transform_indices = @transform_4, window_bounds = array<i64: 1, 1>}, {transform_indices = @transform_5, window_bounds = array<i64: 8, 1>}]} {
    %c0 = arith.constant 0 : index
    %c0_0 = arith.constant 0 : index
    %0 = vector.load %arg1[%c0, %c0_0] : memref<8x32xf32, #tpu.memory_space<vmem>>, vector<8x32xf32>
    %c0_1 = arith.constant 0 : index
    %c0_2 = arith.constant 0 : index
    %1 = vector.load %arg2[%c0_1, %c0_2] : memref<32x32xf32, #tpu.memory_space<vmem>>, vector<32x32xf32>
    %cst = arith.constant dense<0.000000e+00> : vector<8x32xf32>
    %2 = tpu.matmul %0, %1, %cst {dimension_numbers = #tpu.dot_dimension_numbers<[1], [0], [0], [1], [0, 0, 1, 1], [], []>} : vector<8x32xf32>, vector<32x32xf32>, vector<8x32xf32> -> vector<8x32xf32>
    %c0_3 = arith.constant 0 : index
    %c0_4 = arith.constant 0 : index
    %3 = vector.load %arg3[%c0_3, %c0_4] : memref<1x32xf32, #tpu.memory_space<vmem>>, vector<1x32xf32>
    %4 = vector.broadcast %3 : vector<1x32xf32> to vector<8x32xf32>
    %5 = arith.addf %2, %4 : vector<8x32xf32>
    %6 = vector.extract_strided_slice %5 {offsets = [0, 0], sizes = [8, 16], strides = [1, 1]} : vector<8x32xf32> to vector<8x16xf32>
    %7 = math.tanh %6 : vector<8x16xf32>
    %8 = vector.extract_strided_slice %5 {offsets = [0, 16], sizes = [8, 16], strides = [1, 1]} : vector<8x32xf32> to vector<8x16xf32>
    %9 = arith.negf %8 : vector<8x16xf32>
    %10 = math.exp %9 : vector<8x16xf32>
    %cst_5 = arith.constant 1.000000e+00 : f32
    %11 = vector.broadcast %cst_5 : f32 to vector<8x16xf32>
    %12 = arith.addf %11, %10 : vector<8x16xf32>
    %13 = arith.divf %11, %12 : vector<8x16xf32>
    %14 = arith.mulf %7, %13 : vector<8x16xf32>
    %c0_6 = arith.constant 0 : index
    %c0_7 = arith.constant 0 : index
    %15 = vector.load %arg4[%c0_6, %c0_7] : memref<1x16xf32, #tpu.memory_space<vmem>>, vector<1x16xf32>
    %16 = vector.broadcast %15 : vector<1x16xf32> to vector<8x16xf32>
    %17 = arith.mulf %14, %16 : vector<8x16xf32>
    %cst_8 = arith.constant dense<0.000000e+00> : vector<8xf32>
    %18 = vector.multi_reduction <add>, %17, %cst_8 [1] : vector<8x16xf32> to vector<8xf32>
    %19 = vector.shape_cast %18 : vector<8xf32> to vector<8x1xf32>
    %c0_9 = arith.constant 0 : index
    %c0_10 = arith.constant 0 : index
    %20 = vector.load %arg5[%c0_9, %c0_10] : memref<1x1xf32, #tpu.memory_space<vmem>>, vector<1x1xf32>
    %21 = vector.broadcast %20 : vector<1x1xf32> to vector<8x1xf32>
    %22 = arith.addf %19, %21 : vector<8x1xf32>
    %c0_11 = arith.constant 0 : index
    %c0_12 = arith.constant 0 : index
    %23 = vector.load %arg6[%c0_11, %c0_12] : memref<8x1xf32, #tpu.memory_space<vmem>>, vector<8x1xf32>
    tpu.vector_store %arg6[%c0_11, %c0_12], %22 {strides = array<i32>} : memref<8x1xf32, #tpu.memory_space<vmem>>, vector<8x1xf32>,
    return
  }
  func.func @transform_0(%arg0: i32) -> (i32, i32) {
    %c0_i32 = arith.constant 0 : i32
    %c0_i32_0 = arith.constant 0 : i32
    return %arg0, %c0_i32 : i32, i32
  }
  func.func @transform_1(%arg0: i32) -> (i32, i32) {
    %c0_i32 = arith.constant 0 : i32
    %c0_i32_0 = arith.constant 0 : i32
    %c0_i32_1 = arith.constant 0 : i32
    return %c0_i32, %c0_i32_0 : i32, i32
  }
  func.func @transform_2(%arg0: i32) -> (i32, i32) {
    %c0_i32 = arith.constant 0 : i32
    %c0_i32_0 = arith.constant 0 : i32
    %c0_i32_1 = arith.constant 0 : i32
    return %c0_i32, %c0_i32_0 : i32, i32
  }
  func.func @transform_3(%arg0: i32) -> (i32, i32) {
    %c0_i32 = arith.constant 0 : i32
    %c0_i32_0 = arith.constant 0 : i32
    %c0_i32_1 = arith.constant 0 : i32
    return %c0_i32, %c0_i32_0 : i32, i32
  }
  func.func @transform_4(%arg0: i32) -> (i32, i32) {
    %c0_i32 = arith.constant 0 : i32
    %c0_i32_0 = arith.constant 0 : i32
    %c0_i32_1 = arith.constant 0 : i32
    return %c0_i32, %c0_i32_0 : i32, i32
  }
  func.func @transform_5(%arg0: i32) -> (i32, i32) {
    %c0_i32 = arith.constant 0 : i32
    %c0_i32_0 = arith.constant 0 : i32
    return %arg0, %c0_i32 : i32, i32
  }
}

</mosaic_0001>

<bundles_post_ra>
// kernel: tpu_custom_call.1
= control target key start
LH: loop header
LB: loop body
LE: loop exit
PB: predicated region body
PF: predicated region fallthrough
CT: control target
= control target key end

     0   :  { %s344_s0 = inlined_call_operand.hbm [shape: f32[8,32], index: 0, kind: input, shape index: {}]   ;;  %s345_s1 = inlined_call_operand.hbm [shape: f32[32,32], index: 1, kind: input, shape index: {}]   ;;  %s346_s2 = inlined_call_operand.vmem [shape: f32[1,32], index: 2, kind: input, shape index: {}]   ;;  %s347_s3 = inlined_call_operand.vmem [shape: f32[1,16], index: 3, kind: input, shape index: {}]   ;;  %s348_s4 = inlined_call_operand.<no memory space> [shape: f32[1,1], index: 4, kind: input, shape index: {}]   ;;  %s349_s5 = inlined_call_operand.vmem [shape: f32[8,1], index: 5, kind: output, shape index: {}]  }
   0x1   :  { %v10_v0 = vstv %s348_s4 }
   0x2   :  { %11 = vst [vmem:[#allocation2] sm:$0x1] %v10_v0 }
   0x3   :  { %12 = vsyncpa [#allocation4], 0 }
   0x4   :  { %13 = vsyncpa [#allocation6], 0  ;;  %s263_s20 = smov [#allocation3]   ;;  %s264_s22 = smov [#allocation5]  }
   0x5   :  { %s20_s21 = sshll.u32 %s263_s20, 4  ;;  %s29_s23 = sshll.u32 %s264_s22, 4  ;;  %s21_s21 = int_to_ptr.vmem [resolvable:$true] %s20_s21  ;;  %s304_s23 = int_to_ptr.vmem [resolvable:$true] %s29_s23 }
   0x6   :  { %s215_s26 = scalar_lea.hbm %s344_s0, 128 }
   0x7   :  { %p216_p0 = scmp.ne.s32.totalorder %s344_s0, %s215_s26  ;;  %p219_p1 = scmp.lt.u32.totalorder %s215_s26, %s344_s0 }
   0x9   :  { %p221_p2 = pnand %p219_p1, %p216_p0 }
   0xb   :  { %224 = shalt.err (!%p221_p2)
}
   0xc   :  { %s225_s30 = scalar_lea.vmem %s21_s21, 128  ;;  %p230_p4 = scmp.lt.s32.totalorder %s21_s21, %s21_s21 }
   0xd   :  { %p226_p3 = scmp.ne.s32.totalorder %s21_s21, %s225_s30  ;;  %p231_p5 = scmp.lt.s32.totalorder %s225_s30, %s225_s30 }
   0xf   :  { %p232_p6 = por %p231_p5, %p230_p4 }
  0x11   :  { %p233_p7 = pnand %p232_p6, %p226_p3 }
  0x13   :  { %236 = shalt.err (!%p233_p7)
}
  0x14   :  { %23 = dma.hbm_to_vmem [thread:$0]  %s344_s0, 128, %s21_s21, [#allocation4]  }
  0x15   :  { %s237_s10 = scalar_lea.hbm %s345_s1, 512 }
  0x16   :  { %p238_p8 = scmp.ne.s32.totalorder %s345_s1, %s237_s10  ;;  %p241_p9 = scmp.lt.u32.totalorder %s237_s10, %s345_s1 }
  0x18   :  { %p243_p10 = pnand %p241_p9, %p238_p8 }
  0x1a   :  { %246 = shalt.err (!%p243_p10)
}
  0x1b   :  { %s247_s15 = scalar_lea.vmem %s304_s23, 512  ;;  %p252_p12 = scmp.lt.s32.totalorder %s304_s23, %s304_s23 }
  0x1c   :  { %p248_p11 = scmp.ne.s32.totalorder %s304_s23, %s247_s15  ;;  %p253_p13 = scmp.lt.s32.totalorder %s247_s15, %s247_s15 }
  0x1e   :  { %p254_p0 = por %p253_p13, %p252_p12 }
  0x20   :  { %p255_p1 = pnand %p254_p0, %p248_p11 }
  0x22   :  { %258 = shalt.err (!%p255_p1)
}
  0x23   :  { %s265_s0 = smov 128   ;;  %s266_s16 = smov 8  }
  0x24   :  { %35 = dma.hbm_to_vmem [thread:$0]  %s345_s1, 512, %s304_s23, [#allocation6], %s265_s0, %s265_s0, %s266_s16  }
  0x25   :  { %259 = dma.done.wait [#allocation4], 128  }
  0x26   :  { %260 = vsyncadd [#allocation4], 4294967168 }
  0x27   :  { %261 = dma.done.wait [#allocation6], 512  }
  0x28   :  { %262 = vsyncadd [#allocation6], 4294966784  ;;  %v267_v1 = vmov 0.0|0.0   ;;  %vm268_vm0 = vmmov 0   ;;  %v269_v2 = vmov 0.0   ;;  %v49_v3 = vld [vmem:[#allocation5] sm:$0xff] }
  0x29   :  { %195 = vmatprep.subr.bf16.mxu0 %v267_v1  ;;  %192 = vmatprep.mubr.msk.f32.mxu0 %vm268_vm0, %v269_v2  ;;  %v50_v4 = vld [vmem:[#allocation5 + $0x8] sm:$0xff]  ;;  %v51_v5 = vld [vmem:[#allocation5 + $0x10] sm:$0xff]  ;;  %v52_v7 = vld [vmem:[#allocation5 + $0x18] sm:$0xff]  ;;  %vm60_vm1 = vcmask 261120   ;;  %s270_s20 = smov 112   ;;  %vm154_vm2 = vcmask 130048  }
  0x2a   :  { %v196_v6 = vpack.c.bf16 %v50_v4, %v49_v3  ;;  %v199_v8 = vpack.c.bf16 %v52_v7, %v51_v5  ;;  %v48_v9 = vld [vmem:[#allocation3] sm:$0xff]  ;;  %v174_v10 = vld [vmem:[%s346_s2] ss:$0 sm:$0xff]  ;;  %vm166_vm3 = vcmask 7168  }
  0x2b   :  { %v177_v20 = vld [vmem:[%s347_s3] ss:$0 sm:$0xff] }
  0x2c   :  { %197 = vmatpush3.bf16.msra.mxu0 %v196_v6  ;;  %v178_v24 = vld [vmem:[#allocation2] ss:$0 sm:$0xff] }
  0x2d   :  { %198 = vmatprep.subr.bf16.mxu0 %v267_v1 }
  0x30   :  { %200 = vmatpush3.bf16.msra.mxu0 %v199_v8 }
  0x33   :  { %193 = vmatmul.mubr.msk.f32.vlgmr.msra.gmra.mrb[0].mxu0 %vm60_vm1, %v48_v9 }
 0x106   :  { %v130_v11 = vpop.f32.mrb[0].mxu0 }
 0x107   :  { %v131_v12 = vadd.f32 %v174_v10, %v130_v11  ;;  %v194_v13 = vpop.f32.mrb[1].mxu0 }
 0x109   :  { %v176_v14 = vmul.f32 -1.442695, %v131_v12 }
 0x10b   :  { %209 = vpow2.f32 %v176_v14 }
 0x115   :  { %v210_v15 = vpop.eup %209 }
 0x116   :  { %v138_v16 = vadd.f32 1.0, %v210_v15 }
 0x118   :  { %211 = vrcp.f32 %v138_v16 }
 0x119   :  { %213 = vtanh.f32 %v131_v12 }
 0x122   :  { %v212_v17 = vpop.eup %211 }
 0x123   :  { %142 = vrot.lane.b32.xlu0 %v212_v17, %s270_s20  ;;  %v214_v18 = vpop.eup %213 }
 0x195   :  { %v143_v19 = vpop.permute.xlu0 %142 }
 0x196   :  { %v145_v21 = vmul.f32 %v214_v18, %v143_v19 }
 0x198   :  { %v153_v22 = vmul.f32 %v177_v20, %v145_v21 }
 0x19a   :  { %v155_v23 = vsel %vm154_vm2, %v153_v22, 0.0 }
 0x19b   :  { %156 = vadd.xlane.f32.xlu0 %v155_v23 }
 0x228   :  { %v157_v25 = vpop.xlane.xlu0 %156 }
 0x229   :  { %v165_v26 = vadd.f32 %v178_v24, %v157_v25 }
 0x22b   :  { %167 = vst.msk [vmem:[%s349_s5] sm:$0xff] %vm166_vm3, %v165_v26 }
 0x22c   :  { %172 = vsyncpa [#allocation4], 1 }
 0x22d   :  { %173 = vsyncpa [#allocation6], 1 }

</bundles_post_ra>
